<compile_context>
chip_gen: v7x
topology: tpu7x:2x2x1
jax: 0.10.0
libtpu: 0.0.40
codegen_flags: <defaults>
</compile_context>

<pallas_src>
import jax
import jax.numpy as jnp
from jax import lax
from jax.experimental import pallas as pl
from jax.experimental.pallas import tpu as pltpu


def _switch_gnn_kernel(adj_ref, x_ref, w_ref, b_ref, o_ref):
    """adj_ref: (T, N, N) f32 edge-count adjacency with adj[t, dst, src],
    x_ref: (N, F) f32, w_ref: (T, F, H) f32, b_ref: (T, H) f32,
    o_ref: (N, H) f32."""
    T, N, _ = adj_ref.shape
    F = x_ref.shape[1]

    # In-kernel casts (VPU, hidden under MXU slack). Adjacency entries are
    # small integer edge counts -> bf16 is lossless for them.
    # Leading-dim collapse (T, N, N) -> (T*N, N) is layout-preserving (free).
    a2d = adj_ref[...].reshape(T * N, N).astype(jnp.bfloat16)
    x_b = x_ref[...].astype(jnp.bfloat16)

    # Stage A: all per-type neighbour aggregations as ONE wide MXU matmul
    #   (T*N, N) @ (N, F) -> (T*N, F), f32 accumulation.
    y = jnp.dot(a2d, x_b, preferred_element_type=jnp.float32)

    # Stage B: batched per-type projection (T, N, F) x (T, F, H) -> (T, N, H).
    # Split of the leading dim is layout-preserving (N is a multiple of 8).
    y3 = y.reshape(T, N, F).astype(jnp.bfloat16)
    w_b = w_ref[...].astype(jnp.bfloat16)
    z = lax.dot_general(
        y3, w_b,
        dimension_numbers=(((2,), (1,)), ((0,), (0,))),
        preferred_element_type=jnp.float32)

    # Sum over the T type slabs (cheap VPU adds) + hoisted bias sum, scale 1/T.
    msg = jnp.sum(z, axis=0)                                # (N, H)
    b_sum = jnp.sum(b_ref[...], axis=0, keepdims=True)      # (1, H)
    inv_t = 1.0 / T
    o_ref[...] = ((msg + b_sum) * inv_t).astype(o_ref.dtype)


@jax.jit
def switch_gnn_forward(adj, x, w, b):
    """adj: (T, N, N) f32 edge-count adjacency (adj[t, dst, src]), x: (N, F) f32,
    w: (T, F, H) f32, b: (T, H) f32  ->  (N, H) f32."""
    _, N, _ = adj.shape
    H = w.shape[2]

    # No grid, no wrapper-side relayout/casts: whole arrays land in VMEM once,
    # the kernel body runs exactly once (no pipeline prologue/epilogue, no
    # double-buffering of the tiny operands).
    vmem = pl.BlockSpec(memory_space=pltpu.MemorySpace.VMEM)
    return pl.pallas_call(
        _switch_gnn_kernel,
        out_shape=jax.ShapeDtypeStruct((N, H), jnp.float32),
        in_specs=[vmem, vmem, vmem, vmem],
        out_specs=vmem,
    )(adj, x, w, b)


def _edge_index_to_dense(edge_index, num_nodes):
    """edge_index: (2, E) int32 [src; dst] -> dense A with A[dst, src] = edge count.

    Uses scatter-add so duplicate edges keep their multiplicity, matching a
    sum-aggregation GraphConv over a multigraph edge_index."""
    src, dst = edge_index[0], edge_index[1]
    a = jnp.zeros((num_nodes, num_nodes), jnp.float32)
    return a.at[dst, src].add(1.0)


if __name__ == "__main__":
    # HDE-graph edge types (sorted, as in the module's forward loop)
    EDGE_TYPES = sorted([
        "candidate2candidate", "candidate2document", "candidate2entity",
        "codocument", "comention", "document2entity", "entity",
    ])
    T = len(EDGE_TYPES)           # 7 edge types
    N = 64                        # number of graph nodes
    IN_SIZE = 32                  # in_size
    HIDDEN = 32                   # hidden_size
    E = 128                       # edges per type

    key = jax.random.PRNGKey(0)
    k_x, k_w, k_b, k_e = jax.random.split(key, 4)

    # Node features and deterministic per-edge-type GNN parameters
    x = jax.random.normal(k_x, (N, IN_SIZE), dtype=jnp.float32)
    w = jax.random.normal(k_w, (T, IN_SIZE, HIDDEN), dtype=jnp.float32) * 0.1
    b = jax.random.normal(k_b, (T, HIDDEN), dtype=jnp.float32) * 0.01

    # Per-edge-type edge_index -> dense adjacency (glue, outside the kernel)
    e_keys = jax.random.split(k_e, T)
    adjs = []
    for t in range(T):
        eidx = jax.random.randint(e_keys[t], (2, E), 0, N, dtype=jnp.int32)
        adjs.append(_edge_index_to_dense(eidx, N))
    adj = jnp.stack(adjs, axis=0)  # (T, N, N)

    out = switch_gnn_forward(adj, x, w, b)
    out = jax.block_until_ready(out)

    # Reference mirroring the kernel's rounding points (bf16 MXU operands,
    # f32 accumulation), so bf16 rounding is the only divergence.
    adj_b = adj.astype(jnp.bfloat16).astype(jnp.float32)
    x_b = x.astype(jnp.bfloat16).astype(jnp.float32)
    w_b = w.astype(jnp.bfloat16).astype(jnp.float32)
    y_ref = jnp.einsum("tnm,mf->tnf", adj_b, x_b)
    y_ref = y_ref.astype(jnp.bfloat16).astype(jnp.float32)
    z_ref = jnp.einsum("tnf,tfh->tnh", y_ref, w_b)
    ref = (jnp.sum(z_ref, axis=0) + jnp.sum(b, axis=0)[None, :]) / T

    assert out.shape == (N, HIDDEN)
    assert jnp.allclose(out, ref, atol=2e-2, rtol=2e-2), \
        float(jnp.max(jnp.abs(out - ref)))

    print("KERNEL_OK")
</pallas_src>

<mosaic_0001>
module attributes {stable_mosaic.version = 11 : i64} {
  func.func @_switch_gnn_kernel(%arg0: memref<7x64x64xf32, #tpu.memory_space<vmem>>, %arg1: memref<64x32xf32, #tpu.memory_space<vmem>>, %arg2: memref<7x32x32xf32, #tpu.memory_space<vmem>>, %arg3: memref<7x32xf32, #tpu.memory_space<vmem>>, %arg4: memref<64x32xf32, #tpu.memory_space<vmem>>) attributes {dimension_semantics = [], scalar_prefetch = 0 : i64, scratch_operands = 0 : i64, tpu.core_type = #tpu.core_type<tc>} {
    %c0 = arith.constant 0 : index
    %c0_0 = arith.constant 0 : index
    %c0_1 = arith.constant 0 : index
    %0 = vector.load %arg0[%c0, %c0_0, %c0_1] : memref<7x64x64xf32, #tpu.memory_space<vmem>>, vector<7x64x64xf32>
    %1 = vector.shape_cast %0 : vector<7x64x64xf32> to vector<448x64xf32>
    %2 = arith.truncf %1 : vector<448x64xf32> to vector<448x64xbf16>
    %c0_2 = arith.constant 0 : index
    %c0_3 = arith.constant 0 : index
    %3 = vector.load %arg1[%c0_2, %c0_3] : memref<64x32xf32, #tpu.memory_space<vmem>>, vector<64x32xf32>
    %4 = arith.truncf %3 : vector<64x32xf32> to vector<64x32xbf16>
    %cst = arith.constant dense<0.000000e+00> : vector<448x32xf32>
    %5 = tpu.matmul %2, %4, %cst {dimension_numbers = #tpu.dot_dimension_numbers<[1], [0], [0], [1], [0, 0, 1, 1], [], []>} : vector<448x64xbf16>, vector<64x32xbf16>, vector<448x32xf32> -> vector<448x32xf32>
    %6 = vector.shape_cast %5 : vector<448x32xf32> to vector<7x64x32xf32>
    %7 = arith.truncf %6 : vector<7x64x32xf32> to vector<7x64x32xbf16>
    %c0_4 = arith.constant 0 : index
    %c0_5 = arith.constant 0 : index
    %c0_6 = arith.constant 0 : index
    %8 = vector.load %arg2[%c0_4, %c0_5, %c0_6] : memref<7x32x32xf32, #tpu.memory_space<vmem>>, vector<7x32x32xf32>
    %9 = arith.truncf %8 : vector<7x32x32xf32> to vector<7x32x32xbf16>
    %cst_7 = arith.constant dense<0.000000e+00> : vector<7x64x32xf32>
    %10 = tpu.matmul %7, %9, %cst_7 {dimension_numbers = #tpu.dot_dimension_numbers<[2], [1], [1], [2], [0, 0, 0, 1, 1, 2], [0], [0]>} : vector<7x64x32xbf16>, vector<7x32x32xbf16>, vector<7x64x32xf32> -> vector<7x64x32xf32>
    %cst_8 = arith.constant dense<0.000000e+00> : vector<64x32xf32>
    %11 = vector.multi_reduction <add>, %10, %cst_8 [0] : vector<7x64x32xf32> to vector<64x32xf32>
    %c0_9 = arith.constant 0 : index
    %c0_10 = arith.constant 0 : index
    %12 = vector.load %arg3[%c0_9, %c0_10] : memref<7x32xf32, #tpu.memory_space<vmem>>, vector<7x32xf32>
    %cst_11 = arith.constant dense<0.000000e+00> : vector<32xf32>
    %13 = vector.multi_reduction <add>, %12, %cst_11 [0] : vector<7x32xf32> to vector<32xf32>
    %14 = vector.shape_cast %13 : vector<32xf32> to vector<1x32xf32>
    %15 = vector.broadcast %14 : vector<1x32xf32> to vector<64x32xf32>
    %16 = arith.addf %11, %15 : vector<64x32xf32>
    %cst_12 = arith.constant 0.142857149 : f32
    %17 = vector.broadcast %cst_12 : f32 to vector<64x32xf32>
    %18 = arith.mulf %16, %17 : vector<64x32xf32>
    %c0_13 = arith.constant 0 : index
    %c0_14 = arith.constant 0 : index
    %19 = vector.load %arg4[%c0_13, %c0_14] : memref<64x32xf32, #tpu.memory_space<vmem>>, vector<64x32xf32>
    tpu.vector_store %arg4[%c0_13, %c0_14], %18 {strides = array<i32>} : memref<64x32xf32, #tpu.memory_space<vmem>>, vector<64x32xf32>,
    return
  }
}

</mosaic_0001>

<bundles_post_ra>
// kernel: switch_gnn_forward.1
= control target key start
LH: loop header
LB: loop body
LE: loop exit
PB: predicated region body
PF: predicated region fallthrough
CT: control target
= control target key end

     0   :  { %9 = vsyncpa [#allocation3], 0  ;;  %s1791_s0 = inlined_call_operand.hbm [shape: f32[7,64,64], index: 0, kind: input, shape index: {}]   ;;  %s1792_s1 = inlined_call_operand.vmem [shape: f32[64,32], index: 1, kind: input, shape index: {}]   ;;  %s1793_s2 = inlined_call_operand.hbm [shape: f32[7,32,32], index: 2, kind: input, shape index: {}]   ;;  %s1794_s3 = inlined_call_operand.vmem [shape: f32[7,32], index: 3, kind: input, shape index: {}]   ;;  %s1795_s4 = inlined_call_operand.vmem [shape: f32[64,32], index: 4, kind: output, shape index: {}]  }
   0x1   :  { %10 = vsyncpa [#allocation5], 0  ;;  %s1567_s15 = smov [#allocation2]   ;;  %s1519_s19 = scalar_lea.hbm %s1791_s0, 7168 }
   0x2   :  { %s16_s16 = sshll.u32 %s1567_s15, 4  ;;  %p1520_p0 = scmp.ne.s32.totalorder %s1791_s0, %s1519_s19  ;;  %s17_s16 = int_to_ptr.vmem [resolvable:$true] %s16_s16 }
   0x3   :  { %p1523_p1 = scmp.lt.u32.totalorder %s1519_s19, %s1791_s0 }
   0x5   :  { %p1525_p2 = pnand %p1523_p1, %p1520_p0 }
   0x7   :  { %1528 = shalt.err (!%p1525_p2)
}
   0x8   :  { %s1529_s24 = scalar_lea.vmem %s17_s16, 7168  ;;  %p1534_p4 = scmp.lt.s32.totalorder %s17_s16, %s17_s16 }
   0x9   :  { %p1530_p3 = scmp.ne.s32.totalorder %s17_s16, %s1529_s24  ;;  %p1535_p5 = scmp.lt.s32.totalorder %s1529_s24, %s1529_s24 }
   0xb   :  { %p1536_p6 = por %p1535_p5, %p1534_p4 }
   0xd   :  { %p1537_p7 = pnand %p1536_p6, %p1530_p3 }
   0xf   :  { %1540 = shalt.err (!%p1537_p7)
}
  0x10   :  { %s1568_s25 = smov 128   ;;  %s1569_s26 = smov 8  }
  0x11   :  { %22 = dma.hbm_to_vmem [thread:$0]  %s1791_s0, 7168, %s17_s16, [#allocation3], %s1568_s25, %s1568_s25, %s1569_s26  }
  0x12   :  { %s1570_s29 = smov [#allocation4]   ;;  %s1541_s7 = scalar_lea.hbm %s1793_s2, 3584 }
  0x13   :  { %s30_s30 = sshll.u32 %s1570_s29, 4  ;;  %p1542_p8 = scmp.ne.s32.totalorder %s1793_s2, %s1541_s7  ;;  %s31_s30 = int_to_ptr.vmem [resolvable:$true] %s30_s30 }
  0x14   :  { %p1545_p9 = scmp.lt.u32.totalorder %s1541_s7, %s1793_s2 }
  0x16   :  { %p1547_p10 = pnand %p1545_p9, %p1542_p8 }
  0x18   :  { %1550 = shalt.err (!%p1547_p10)
}
  0x19   :  { %s1551_s12 = scalar_lea.vmem %s31_s30, 3584  ;;  %p1556_p12 = scmp.lt.s32.totalorder %s31_s30, %s31_s30 }
  0x1a   :  { %p1552_p11 = scmp.ne.s32.totalorder %s31_s30, %s1551_s12  ;;  %p1557_p13 = scmp.lt.s32.totalorder %s1551_s12, %s1551_s12 }
  0x1c   :  { %p1558_p0 = por %p1557_p13, %p1556_p12 }
  0x1e   :  { %p1559_p1 = pnand %p1558_p0, %p1552_p11 }
  0x20   :  { %1562 = shalt.err (!%p1559_p1)
}
  0x21   :  { %36 = dma.hbm_to_vmem [thread:$0]  %s1793_s2, 3584, %s31_s30, [#allocation5], %s1568_s25, %s1568_s25, %s1569_s26  }
  0x22   :  { %1563 = dma.done.wait [#allocation3], 7168  }
  0x23   :  { %1564 = vsyncadd [#allocation3], 4294960128 }
  0x24   :  { %1565 = dma.done.wait [#allocation5], 3584  }
  0x25   :  { %1566 = vsyncadd [#allocation5], 4294963712  ;;  %v130_v0 = vld [vmem:[%s1792_s1] sm:$0xff]  ;;  %v131_v1 = vld [vmem:[%s1792_s1 + $0x8] sm:$0xff]  ;;  %vm142_vm0 = vcmask 523264   ;;  %vm554_vm1 = vcmask 261120  }
  0x26   :  { %v132_v2 = vld [vmem:[%s1792_s1 + $0x10] sm:$0xff]  ;;  %v138_v3 = vpack.c.bf16 %v131_v1, %v130_v0  ;;  %v133_v4 = vld [vmem:[%s1792_s1 + $0x18] sm:$0xff]  ;;  %v134_v6 = vld [vmem:[%s1792_s1 + $0x20] sm:$0xff]  ;;  %vm1199_vm2 = vcmask 260096  }
  0x27   :  { %v139_v5 = vpack.c.bf16 %v133_v4, %v132_v2  ;;  %v135_v7 = vld [vmem:[%s1792_s1 + $0x28] sm:$0xff]  ;;  %v46_v8 = vld [vmem:[#allocation2] sm:$0xff]  ;;  %v136_v12 = vld [vmem:[%s1792_s1 + $0x30] sm:$0xff] }
  0x28   :  { %1367 = vmatprep.subr.bf16.mxu0 %v138_v3  ;;  %v47_v9 = vld [vmem:[#allocation2 + $0x8] sm:$0xff]  ;;  %v140_v11 = vpack.c.bf16 %v135_v7, %v134_v6  ;;  %v137_v13 = vld [vmem:[%s1792_s1 + $0x38] sm:$0xff]  ;;  %v48_v15 = vld [vmem:[#allocation2 + $0x10] sm:$0xff] }
  0x29   :  { %1368 = vmatpush3.bf16.msra.mxu0 %v138_v3  ;;  %v102_v10 = vpack.c.bf16 %v47_v9, %v46_v8  ;;  %v141_v14 = vpack.c.bf16 %v137_v13, %v136_v12  ;;  %v49_v16 = vld [vmem:[#allocation2 + $0x18] sm:$0xff]  ;;  %v50_v17 = vld [vmem:[#allocation2 + $0x20] sm:$0xff]  ;;  %v51_v18 = vld [vmem:[#allocation2 + $0x28] sm:$0xff] }
  0x2a   :  { %1369 = vmatprep.subr.bf16.mxu0 %v139_v5  ;;  %v103_v19 = vpack.c.bf16 %v49_v16, %v48_v15  ;;  %v104_v20 = vpack.c.bf16 %v51_v18, %v50_v17  ;;  %v52_v21 = vld [vmem:[#allocation2 + $0x30] sm:$0xff]  ;;  %v53_v22 = vld [vmem:[#allocation2 + $0x38] sm:$0xff]  ;;  %v54_v23 = vld [vmem:[#allocation2 + $0x40] sm:$0xff] }
  0x2b   :  { %1375 = vmatprep.mubr.msk.bf16.mxu0 %vm142_vm0, %v102_v10  ;;  %v55_v24 = vld [vmem:[#allocation2 + $0x48] sm:$0xff]  ;;  %v512_v25 = vld [vmem:[#allocation4] sm:$0xff]  ;;  %v105_v28 = vpack.c.bf16 %v53_v22, %v52_v21  ;;  %v56_v30 = vld [vmem:[#allocation2 + $0x50] sm:$0xff] }
  0x2c   :  { %v513_v26 = vld [vmem:[#allocation4 + $0x8] sm:$0xff]  ;;  %v106_v29 = vpack.c.bf16 %v55_v24, %v54_v23  ;;  %v57_v31 = vld [vmem:[#allocation2 + $0x58] sm:$0xff]  ;;  %v58_v32 = vld [vmem:[#allocation2 + $0x60] sm:$0xff] }
  0x2d   :  { %1370 = vmatpush3.bf16.msra.mxu0 %v139_v5  ;;  %v540_v27 = vpack.c.bf16 %v513_v26, %v512_v25  ;;  %v59_v33 = vld [vmem:[#allocation2 + $0x68] sm:$0xff]  ;;  %v107_v34 = vpack.c.bf16 %v57_v31, %v56_v30  ;;  %v60_v36 = vld [vmem:[#allocation2 + $0x70] sm:$0xff]  ;;  %v61_v37 = vld [vmem:[#allocation2 + $0x78] sm:$0xff] }
  0x2e   :  { %1371 = vmatprep.subr.bf16.mxu0 %v140_v11  ;;  %v108_v35 = vpack.c.bf16 %v59_v33, %v58_v32  ;;  %v62_v38 = vld [vmem:[#allocation2 + $0x80] sm:$0xff]  ;;  %v63_v39 = vld [vmem:[#allocation2 + $0x88] sm:$0xff]  ;;  %v109_v40 = vpack.c.bf16 %v61_v37, %v60_v36  ;;  %v64_v42 = vld [vmem:[#allocation2 + $0x90] sm:$0xff] }
  0x2f   :  { %1431 = vmatprep.subr.bf16.mxu1 %v540_v27  ;;  %v110_v41 = vpack.c.bf16 %v63_v39, %v62_v38  ;;  %v65_v43 = vld [vmem:[#allocation2 + $0x98] sm:$0xff]  ;;  %v66_v44 = vld [vmem:[#allocation2 + $0xa0] sm:$0xff]  ;;  %v67_v45 = vld [vmem:[#allocation2 + $0xa8] sm:$0xff] }
  0x30   :  { %1432 = vmatpush3.bf16.msra.mxu1 %v540_v27  ;;  %v111_v46 = vpack.c.bf16 %v65_v43, %v64_v42  ;;  %v112_v47 = vpack.c.bf16 %v67_v45, %v66_v44  ;;  %v68_v48 = vld [vmem:[#allocation2 + $0xb0] sm:$0xff]  ;;  %v69_v49 = vld [vmem:[#allocation2 + $0xb8] sm:$0xff]  ;;  %v70_v50 = vld [vmem:[#allocation2 + $0xc0] sm:$0xff] }
  0x31   :  { %1372 = vmatpush3.bf16.msra.mxu0 %v140_v11  ;;  %v71_v51 = vld [vmem:[#allocation2 + $0xc8] sm:$0xff]  ;;  %v113_v52 = vpack.c.bf16 %v69_v49, %v68_v48  ;;  %v72_v54 = vld [vmem:[#allocation2 + $0xd0] sm:$0xff]  ;;  %v73_v55 = vld [vmem:[#allocation2 + $0xd8] sm:$0xff] }
  0x32   :  { %1373 = vmatprep.subr.bf16.mxu0 %v141_v14  ;;  %v114_v53 = vpack.c.bf16 %v71_v51, %v70_v50  ;;  %v74_v56 = vld [vmem:[#allocation2 + $0xe0] sm:$0xff]  ;;  %v75_v57 = vld [vmem:[#allocation2 + $0xe8] sm:$0xff]  ;;  %v115_v58 = vpack.c.bf16 %v73_v55, %v72_v54  ;;  %v76_v60 = vld [vmem:[#allocation2 + $0xf0] sm:$0xff] }
  0x33   :  { %v116_v59 = vpack.c.bf16 %v75_v57, %v74_v56  ;;  %v77_v61 = vld [vmem:[#allocation2 + $0xf8] sm:$0xff]  ;;  %v78_v62 = vld [vmem:[#allocation2 + $0x100] sm:$0xff]  ;;  %v79_v63 = vld [vmem:[#allocation2 + $0x108] sm:$0xff] }
  0x34   :  { %v117_v0 = vpack.c.bf16 %v77_v61, %v76_v60  ;;  %v118_v1 = vpack.c.bf16 %v79_v63, %v78_v62  ;;  %v80_v2 = vld [vmem:[#allocation2 + $0x110] sm:$0xff]  ;;  %v81_v3 = vld [vmem:[#allocation2 + $0x118] sm:$0xff]  ;;  %v82_v4 = vld [vmem:[#allocation2 + $0x120] sm:$0xff] }
  0x35   :  { %1374 = vmatpush3.bf16.msra.mxu0 %v141_v14  ;;  %v83_v5 = vld [vmem:[#allocation2 + $0x128] sm:$0xff]  ;;  %v119_v6 = vpack.c.bf16 %v81_v3, %v80_v2  ;;  %v84_v8 = vld [vmem:[#allocation2 + $0x130] sm:$0xff]  ;;  %v85_v9 = vld [vmem:[#allocation2 + $0x138] sm:$0xff] }
  0x36   :  { %v120_v7 = vpack.c.bf16 %v83_v5, %v82_v4  ;;  %v86_v10 = vld [vmem:[#allocation2 + $0x140] sm:$0xff]  ;;  %v87_v11 = vld [vmem:[#allocation2 + $0x148] sm:$0xff]  ;;  %v121_v12 = vpack.c.bf16 %v85_v9, %v84_v8  ;;  %v88_v14 = vld [vmem:[#allocation2 + $0x150] sm:$0xff] }
  0x37   :  { %v122_v13 = vpack.c.bf16 %v87_v11, %v86_v10  ;;  %v89_v15 = vld [vmem:[#allocation2 + $0x158] sm:$0xff]  ;;  %v90_v16 = vld [vmem:[#allocation2 + $0x160] sm:$0xff]  ;;  %v91_v17 = vld [vmem:[#allocation2 + $0x168] sm:$0xff] }
  0x38   :  { %1376 = vmatmul.mubr.msk.bf16.vlgmr.msra.gmra.mrb[0].mxu0 %vm142_vm0, %v103_v19  ;;  %v123_v18 = vpack.c.bf16 %v89_v15, %v88_v14  ;;  %v124_v19 = vpack.c.bf16 %v91_v17, %v90_v16  ;;  %v93_v21 = vld [vmem:[#allocation2 + $0x178] sm:$0xff]  ;;  %v94_v22 = vld [vmem:[#allocation2 + $0x180] sm:$0xff]  ;;  %v95_v23 = vld [vmem:[#allocation2 + $0x188] sm:$0xff] }
  0x39   :  { %1379 = vmatprep.mubr.msk.bf16.mxu0 %vm142_vm0, %v104_v20  ;;  %v92_v20 = vld [vmem:[#allocation2 + $0x170] sm:$0xff]  ;;  %v515_v25 = vld [vmem:[#allocation4 + $0x18] sm:$0xff]  ;;  %v516_v31 = vld [vmem:[#allocation4 + $0x20] sm:$0xff] }
  0x3a   :  { %v514_v24 = vld [vmem:[#allocation4 + $0x10] sm:$0xff]  ;;  %v125_v26 = vpack.c.bf16 %v93_v21, %v92_v20  ;;  %v97_v30 = vld [vmem:[#allocation2 + $0x198] sm:$0xff]  ;;  %v517_v32 = vld [vmem:[#allocation4 + $0x28] sm:$0xff] }
  0x3b   :  { %v541_v27 = vpack.c.bf16 %v515_v25, %v514_v24  ;;  %v98_v33 = vld [vmem:[#allocation2 + $0x1a0] sm:$0xff]  ;;  %v100_v38 = vld [vmem:[#allocation2 + $0x1b0] sm:$0xff]  ;;  %v101_v39 = vld [vmem:[#allocation2 + $0x1b8] sm:$0xff] }
  0x3c   :  { %v518_v44 = vld [vmem:[#allocation4 + $0x30] sm:$0xff]  ;;  %v519_v45 = vld [vmem:[#allocation4 + $0x38] sm:$0xff]  ;;  %v520_v50 = vld [vmem:[#allocation4 + $0x40] sm:$0xff] }
  0x3d   :  { %1433 = vmatprep.subr.bf16.mxu1 %v541_v27  ;;  %v543_v49 = vpack.c.bf16 %v519_v45, %v518_v44  ;;  %v521_v51 = vld [vmem:[#allocation4 + $0x48] sm:$0xff]  ;;  %v522_v62 = vld [vmem:[#allocation4 + $0x50] sm:$0xff]  ;;  %v523_v63 = vld [vmem:[#allocation4 + $0x58] sm:$0xff] }
  0x3e   :  { %1434 = vmatpush3.bf16.msra.mxu1 %v541_v27  ;;  %v544_v54 = vpack.c.bf16 %v521_v51, %v520_v50  ;;  %v545_v3 = vpack.c.bf16 %v523_v63, %v522_v62  ;;  %v524_v4 = vld [vmem:[#allocation4 + $0x60] sm:$0xff]  ;;  %v525_v5 = vld [vmem:[#allocation4 + $0x68] sm:$0xff]  ;;  %v526_v16 = vld [vmem:[#allocation4 + $0x70] sm:$0xff] }
  0x3f   :  { %v546_v8 = vpack.c.bf16 %v525_v5, %v524_v4  ;;  %v527_v17 = vld [vmem:[#allocation4 + $0x78] sm:$0xff] }
  0x40   :  { %1380 = vmatmul.mubr.msk.bf16.gmra.mrb[4].mxu0 %vm142_vm0, %v105_v28  ;;  %v126_v28 = vpack.c.bf16 %v95_v23, %v94_v22  ;;  %v547_v21 = vpack.c.bf16 %v527_v17, %v526_v16  ;;  %v528_v22 = vld [vmem:[#allocation4 + $0x80] sm:$0xff]  ;;  %v529_v23 = vld [vmem:[#allocation4 + $0x88] sm:$0xff] }
  0x41   :  { %1383 = vmatprep.mubr.msk.bf16.mxu0 %vm142_vm0, %v106_v29  ;;  %v96_v29 = vld [vmem:[#allocation2 + $0x190] sm:$0xff] }
  0x42   :  { %v127_v36 = vpack.c.bf16 %v97_v30, %v96_v29 }
  0x48   :  { %1384 = vmatmul.mubr.msk.bf16.gmra.mrb[8].mxu0 %vm142_vm0, %v107_v34  ;;  %v99_v34 = vld [vmem:[#allocation2 + $0x1a8] sm:$0xff] }
  0x49   :  { %1387 = vmatprep.mubr.msk.bf16.mxu0 %vm142_vm0, %v108_v35  ;;  %v542_v35 = vpack.c.bf16 %v517_v32, %v516_v31  ;;  %v128_v37 = vpack.c.bf16 %v99_v34, %v98_v33  ;;  %v530_v34 = vld [vmem:[#allocation4 + $0x90] sm:$0xff] }
  0x4b   :  { %1443 = vmatprep.subr.bf16.mxu1 %v542_v35 }
  0x50   :  { %1388 = vmatmul.mubr.msk.bf16.gmra.mrb[12].mxu0 %vm142_vm0, %v109_v40  ;;  %v129_v40 = vpack.c.bf16 %v101_v39, %v100_v38 }
  0x51   :  { %1391 = vmatprep.mubr.msk.bf16.mxu0 %vm142_vm0, %v110_v41 }
  0x58   :  { %1392 = vmatmul.mubr.msk.bf16.gmra.mrb[16].mxu0 %vm142_vm0, %v111_v46 }
  0x59   :  { %1395 = vmatprep.mubr.msk.bf16.mxu0 %vm142_vm0, %v112_v47 }
  0x60   :  { %1396 = vmatmul.mubr.msk.bf16.gmra.mrb[20].mxu0 %vm142_vm0, %v113_v52 }
  0x61   :  { %1399 = vmatprep.mubr.msk.bf16.mxu0 %vm142_vm0, %v114_v53 }
  0x68   :  { %1400 = vmatmul.mubr.msk.bf16.gmra.mrb[24].mxu0 %vm142_vm0, %v115_v58 }
  0x69   :  { %1403 = vmatprep.mubr.msk.bf16.mxu0 %vm142_vm0, %v116_v59 }
  0x70   :  { %1404 = vmatmul.mubr.msk.bf16.gmra.mrb[28].mxu0 %vm142_vm0, %v117_v0 }
  0x71   :  { %1407 = vmatprep.mubr.msk.bf16.mxu0 %vm142_vm0, %v118_v1 }
  0x78   :  { %1408 = vmatmul.mubr.msk.bf16.gmra.mrb[32].mxu0 %vm142_vm0, %v119_v6 }
  0x79   :  { %1411 = vmatprep.mubr.msk.bf16.mxu0 %vm142_vm0, %v120_v7 }
  0x80   :  { %1412 = vmatmul.mubr.msk.bf16.gmra.mrb[36].mxu0 %vm142_vm0, %v121_v12 }
  0x81   :  { %1415 = vmatprep.mubr.msk.bf16.mxu0 %vm142_vm0, %v122_v13 }
  0x88   :  { %1416 = vmatmul.mubr.msk.bf16.gmra.mrb[40].mxu0 %vm142_vm0, %v123_v18 }
  0x89   :  { %1419 = vmatprep.mubr.msk.bf16.mxu0 %vm142_vm0, %v124_v19 }
  0x90   :  { %1420 = vmatmul.mubr.msk.bf16.gmra.mrb[44].mxu0 %vm142_vm0, %v125_v26  ;;  %v548_v26 = vpack.c.bf16 %v529_v23, %v528_v22 }
  0x91   :  { %1423 = vmatprep.mubr.msk.bf16.mxu0 %vm142_vm0, %v126_v28 }
  0x98   :  { %1424 = vmatmul.mubr.msk.bf16.gmra.mrb[48].mxu0 %vm142_vm0, %v127_v36 }
  0x99   :  { %1427 = vmatprep.mubr.msk.bf16.mxu0 %vm142_vm0, %v128_v37 }
  0xa0   :  { %1428 = vmatmul.mubr.msk.bf16.gmra.mrb[52].mxu0 %vm142_vm0, %v129_v40  ;;  %v532_v40 = vld [vmem:[#allocation4 + $0xa0] sm:$0xff] }
 0x10b   :  { %v1377_v41 = vpop.f32.mrb[0].mxu0 }
 0x10c   :  { %v261_v42 = vpop.f32.mrb[1].mxu0 }
 0x10d   :  { %v1378_v43 = vpop.f32.mrb[2].mxu0 }
 0x10e   :  { %v485_v46 = vpack.c.bf16 %v1378_v43, %v1377_v41  ;;  %v264_v47 = vpop.f32.mrb[3].mxu0  ;;  %v533_v41 = vld [vmem:[#allocation4 + $0xa8] sm:$0xff] }
 0x10f   :  { %v484_v48 = vpack.c.bf16 %v264_v47, %v261_v42  ;;  %v550_v44 = vpack.c.bf16 %v533_v41, %v532_v40 }
 0x111   :  { %1435 = vmatprep.mubr.msk.bf16.mxu1 %vm554_vm1, %v484_v48 }
 0x112   :  { %1436 = vmatmul.mubr.msk.bf16.vlgmr.msra.gmra.mrb[0].mxu1 %vm554_vm1, %v485_v46 }
 0x113   :  { %1444 = vmatpush3.bf16.msra.mxu1 %v542_v35  ;;  %v1381_v52 = vpop.f32.mrb[4].mxu0  ;;  %v531_v35 = vld [vmem:[#allocation4 + $0x98] sm:$0xff] }
 0x114   :  { %v277_v53 = vpop.f32.mrb[5].mxu0  ;;  %1445 = vmatprep.subr.bf16.mxu1 %v543_v49  ;;  %v549_v39 = vpack.c.bf16 %v531_v35, %v530_v34 }
 0x115   :  { %v1382_v55 = vpop.f32.mrb[6].mxu0 }
 0x116   :  { %v487_v56 = vpack.c.bf16 %v1382_v55, %v1381_v52  ;;  %v280_v57 = vpop.f32.mrb[7].mxu0  ;;  %v534_v52 = vld [vmem:[#allocation4 + $0xb0] sm:$0xff] }
 0x117   :  { %v486_v58 = vpack.c.bf16 %v280_v57, %v277_v53  ;;  %1446 = vmatpush3.bf16.msra.mxu1 %v543_v49  ;;  %v535_v53 = vld [vmem:[#allocation4 + $0xb8] sm:$0xff] }
 0x118   :  { %1455 = vmatprep.subr.bf16.mxu1 %v544_v54  ;;  %v551_v57 = vpack.c.bf16 %v535_v53, %v534_v52 }
 0x119   :  { %1439 = vmatprep.mubr.msk.bf16.mxu1 %vm554_vm1, %v486_v58  ;;  %v536_v58 = vld [vmem:[#allocation4 + $0xc0] sm:$0xff] }
 0x11a   :  { %1440 = vmatmul.mubr.msk.bf16.gmra.mrb[4].mxu1 %vm554_vm1, %v487_v56 }
 0x11b   :  { %v1385_v59 = vpop.f32.mrb[8].mxu0 }
 0x11c   :  { %v293_v60 = vpop.f32.mrb[9].mxu0 }
 0x11d   :  { %v1386_v61 = vpop.f32.mrb[10].mxu0 }
 0x11e   :  { %v489_v0 = vpack.c.bf16 %v1386_v61, %v1385_v59  ;;  %v296_v1 = vpop.f32.mrb[11].mxu0  ;;  %v537_v59 = vld [vmem:[#allocation4 + $0xc8] sm:$0xff] }
 0x11f   :  { %v488_v2 = vpack.c.bf16 %v296_v1, %v293_v60  ;;  %v552_v62 = vpack.c.bf16 %v537_v59, %v536_v58 }
 0x121   :  { %1447 = vmatprep.mubr.msk.bf16.mxu1 %vm554_vm1, %v488_v2 }
 0x122   :  { %1448 = vmatmul.mubr.msk.bf16.vlgmr.msra.gmra.mrb[8].mxu1 %vm554_vm1, %v489_v0 }
 0x123   :  { %1456 = vmatpush3.bf16.msra.mxu1 %v544_v54  ;;  %v1389_v6 = vpop.f32.mrb[12].mxu0 }
 0x124   :  { %v309_v7 = vpop.f32.mrb[13].mxu0  ;;  %1457 = vmatprep.subr.bf16.mxu1 %v545_v3 }
 0x125   :  { %v1390_v9 = vpop.f32.mrb[14].mxu0 }
 0x126   :  { %v491_v10 = vpack.c.bf16 %v1390_v9, %v1389_v6  ;;  %v312_v11 = vpop.f32.mrb[15].mxu0  ;;  %v538_v6 = vld [vmem:[#allocation4 + $0xd0] sm:$0xff] }
 0x127   :  { %v490_v12 = vpack.c.bf16 %v312_v11, %v309_v7  ;;  %1458 = vmatpush3.bf16.msra.mxu1 %v545_v3  ;;  %v539_v7 = vld [vmem:[#allocation4 + $0xd8] sm:$0xff] }
 0x128   :  { %1467 = vmatprep.subr.bf16.mxu1 %v546_v8  ;;  %v553_v11 = vpack.c.bf16 %v539_v7, %v538_v6 }
 0x129   :  { %1451 = vmatprep.mubr.msk.bf16.mxu1 %vm554_vm1, %v490_v12 }
 0x12a   :  { %1452 = vmatmul.mubr.msk.bf16.gmra.mrb[12].mxu1 %vm554_vm1, %v491_v10 }
 0x12b   :  { %v1393_v13 = vpop.f32.mrb[16].mxu0 }
 0x12c   :  { %v325_v14 = vpop.f32.mrb[17].mxu0 }
 0x12d   :  { %v1394_v15 = vpop.f32.mrb[18].mxu0 }
 0x12e   :  { %v493_v18 = vpack.c.bf16 %v1394_v15, %v1393_v13  ;;  %v328_v19 = vpop.f32.mrb[19].mxu0 }
 0x12f   :  { %v492_v20 = vpack.c.bf16 %v328_v19, %v325_v14 }
 0x131   :  { %1459 = vmatprep.mubr.msk.bf16.mxu1 %vm554_vm1, %v492_v20 }
 0x132   :  { %1460 = vmatmul.mubr.msk.bf16.vlgmr.msra.gmra.mrb[16].mxu1 %vm554_vm1, %v493_v18 }
 0x133   :  { %1468 = vmatpush3.bf16.msra.mxu1 %v546_v8  ;;  %v1397_v24 = vpop.f32.mrb[20].mxu0 }
 0x134   :  { %v341_v25 = vpop.f32.mrb[21].mxu0  ;;  %1469 = vmatprep.subr.bf16.mxu1 %v547_v21 }
 0x135   :  { %v1398_v27 = vpop.f32.mrb[22].mxu0 }
 0x136   :  { %v495_v28 = vpack.c.bf16 %v1398_v27, %v1397_v24  ;;  %v344_v29 = vpop.f32.mrb[23].mxu0 }
 0x137   :  { %v494_v30 = vpack.c.bf16 %v344_v29, %v341_v25  ;;  %1470 = vmatpush3.bf16.msra.mxu1 %v547_v21 }
 0x138   :  { %1479 = vmatprep.subr.bf16.mxu1 %v548_v26 }
 0x139   :  { %1463 = vmatprep.mubr.msk.bf16.mxu1 %vm554_vm1, %v494_v30 }
 0x13a   :  { %1464 = vmatmul.mubr.msk.bf16.gmra.mrb[20].mxu1 %vm554_vm1, %v495_v28 }
 0x13b   :  { %v1401_v31 = vpop.f32.mrb[24].mxu0 }
 0x13c   :  { %v357_v32 = vpop.f32.mrb[25].mxu0 }
 0x13d   :  { %v1402_v33 = vpop.f32.mrb[26].mxu0 }
 0x13e   :  { %v497_v36 = vpack.c.bf16 %v1402_v33, %v1401_v31  ;;  %v360_v37 = vpop.f32.mrb[27].mxu0 }
 0x13f   :  { %v496_v38 = vpack.c.bf16 %v360_v37, %v357_v32 }
 0x141   :  { %1471 = vmatprep.mubr.msk.bf16.mxu1 %vm554_vm1, %v496_v38 }
 0x142   :  { %1472 = vmatmul.mubr.msk.bf16.vlgmr.msra.gmra.mrb[24].mxu1 %vm554_vm1, %v497_v36 }
 0x143   :  { %1480 = vmatpush3.bf16.msra.mxu1 %v548_v26  ;;  %v1405_v42 = vpop.f32.mrb[28].mxu0 }
 0x144   :  { %v373_v43 = vpop.f32.mrb[29].mxu0  ;;  %1481 = vmatprep.subr.bf16.mxu1 %v549_v39 }
 0x145   :  { %v1406_v45 = vpop.f32.mrb[30].mxu0 }
 0x146   :  { %v499_v46 = vpack.c.bf16 %v1406_v45, %v1405_v42  ;;  %v376_v47 = vpop.f32.mrb[31].mxu0 }
 0x147   :  { %v498_v48 = vpack.c.bf16 %v376_v47, %v373_v43  ;;  %1482 = vmatpush3.bf16.msra.mxu1 %v549_v39 }
 0x148   :  { %1491 = vmatprep.subr.bf16.mxu1 %v550_v44 }
 0x149   :  { %1475 = vmatprep.mubr.msk.bf16.mxu1 %vm554_vm1, %v498_v48 }
 0x14a   :  { %1476 = vmatmul.mubr.msk.bf16.gmra.mrb[28].mxu1 %vm554_vm1, %v499_v46 }
 0x14b   :  { %v1409_v49 = vpop.f32.mrb[32].mxu0 }
 0x14c   :  { %v389_v50 = vpop.f32.mrb[33].mxu0 }
 0x14d   :  { %v1410_v51 = vpop.f32.mrb[34].mxu0 }
 0x14e   :  { %v501_v54 = vpack.c.bf16 %v1410_v51, %v1409_v49  ;;  %v392_v55 = vpop.f32.mrb[35].mxu0 }
 0x14f   :  { %v500_v56 = vpack.c.bf16 %v392_v55, %v389_v50 }
 0x151   :  { %1483 = vmatprep.mubr.msk.bf16.mxu1 %vm554_vm1, %v500_v56 }
 0x152   :  { %1484 = vmatmul.mubr.msk.bf16.vlgmr.msra.gmra.mrb[32].mxu1 %vm554_vm1, %v501_v54 }
 0x153   :  { %1492 = vmatpush3.bf16.msra.mxu1 %v550_v44  ;;  %v1413_v60 = vpop.f32.mrb[36].mxu0 }
 0x154   :  { %v405_v61 = vpop.f32.mrb[37].mxu0  ;;  %1493 = vmatprep.subr.bf16.mxu1 %v551_v57 }
 0x155   :  { %v1414_v63 = vpop.f32.mrb[38].mxu0 }
 0x156   :  { %v503_v0 = vpack.c.bf16 %v1414_v63, %v1413_v60  ;;  %v408_v1 = vpop.f32.mrb[39].mxu0 }
 0x157   :  { %v502_v2 = vpack.c.bf16 %v408_v1, %v405_v61  ;;  %1494 = vmatpush3.bf16.msra.mxu1 %v551_v57 }
 0x158   :  { %1503 = vmatprep.subr.bf16.mxu1 %v552_v62 }
 0x159   :  { %1487 = vmatprep.mubr.msk.bf16.mxu1 %vm554_vm1, %v502_v2 }
 0x15a   :  { %1488 = vmatmul.mubr.msk.bf16.gmra.mrb[36].mxu1 %vm554_vm1, %v503_v0 }
 0x15b   :  { %v1417_v3 = vpop.f32.mrb[40].mxu0 }
 0x15c   :  { %v421_v4 = vpop.f32.mrb[41].mxu0 }
 0x15d   :  { %v1418_v5 = vpop.f32.mrb[42].mxu0 }
 0x15e   :  { %v505_v8 = vpack.c.bf16 %v1418_v5, %v1417_v3  ;;  %v424_v9 = vpop.f32.mrb[43].mxu0 }
 0x15f   :  { %v504_v10 = vpack.c.bf16 %v424_v9, %v421_v4 }
 0x161   :  { %1495 = vmatprep.mubr.msk.bf16.mxu1 %vm554_vm1, %v504_v10 }
 0x162   :  { %1496 = vmatmul.mubr.msk.bf16.vlgmr.msra.gmra.mrb[40].mxu1 %vm554_vm1, %v505_v8 }
 0x163   :  { %1504 = vmatpush3.bf16.msra.mxu1 %v552_v62  ;;  %v1421_v12 = vpop.f32.mrb[44].mxu0 }
 0x164   :  { %v437_v13 = vpop.f32.mrb[45].mxu0  ;;  %1505 = vmatprep.subr.bf16.mxu1 %v553_v11 }
 0x165   :  { %v1422_v14 = vpop.f32.mrb[46].mxu0 }
 0x166   :  { %v507_v15 = vpack.c.bf16 %v1422_v14, %v1421_v12  ;;  %v440_v16 = vpop.f32.mrb[47].mxu0 }
 0x167   :  { %v506_v17 = vpack.c.bf16 %v440_v16, %v437_v13  ;;  %1506 = vmatpush3.bf16.msra.mxu1 %v553_v11 }
 0x169   :  { %1499 = vmatprep.mubr.msk.bf16.mxu1 %vm554_vm1, %v506_v17 }
 0x16a   :  { %1500 = vmatmul.mubr.msk.bf16.gmra.mrb[44].mxu1 %vm554_vm1, %v507_v15 }
 0x16b   :  { %v1425_v18 = vpop.f32.mrb[48].mxu0 }
 0x16c   :  { %v453_v19 = vpop.f32.mrb[49].mxu0 }
 0x16d   :  { %v1426_v20 = vpop.f32.mrb[50].mxu0 }
 0x16e   :  { %v509_v21 = vpack.c.bf16 %v1426_v20, %v1425_v18  ;;  %v456_v22 = vpop.f32.mrb[51].mxu0 }
 0x16f   :  { %v508_v23 = vpack.c.bf16 %v456_v22, %v453_v19 }
 0x171   :  { %1507 = vmatprep.mubr.msk.bf16.mxu1 %vm554_vm1, %v508_v23 }
 0x172   :  { %1508 = vmatmul.mubr.msk.bf16.vlgmr.msra.gmra.mrb[48].mxu1 %vm554_vm1, %v509_v21 }
 0x173   :  { %v1429_v24 = vpop.f32.mrb[52].mxu0 }
 0x174   :  { %v469_v25 = vpop.f32.mrb[53].mxu0 }
 0x175   :  { %v1430_v26 = vpop.f32.mrb[54].mxu0 }
 0x176   :  { %v511_v27 = vpack.c.bf16 %v1430_v26, %v1429_v24  ;;  %v472_v28 = vpop.f32.mrb[55].mxu0 }
 0x177   :  { %v510_v29 = vpack.c.bf16 %v472_v28, %v469_v25 }
 0x179   :  { %1511 = vmatprep.mubr.msk.bf16.mxu1 %vm554_vm1, %v510_v29 }
 0x17a   :  { %1512 = vmatmul.mubr.msk.bf16.gmra.mrb[52].mxu1 %vm554_vm1, %v511_v27 }
 0x1e5   :  { %v1437_v30 = vpop.f32.mrb[0].mxu1 }
 0x1e6   :  { %v601_v31 = vpop.f32.mrb[1].mxu1  ;;  %v1120_v39 = vsel %vm554_vm1, %v1437_v30, 0.0 }
 0x1e7   :  { %v1438_v32 = vpop.f32.mrb[2].mxu1  ;;  %v1094_v42 = vsel %vm554_vm1, %v601_v31, 0.0 }
 0x1e8   :  { %v604_v33 = vpop.f32.mrb[3].mxu1  ;;  %v1133_v46 = vsel %vm554_vm1, %v1438_v32, 0.0 }
 0x1e9   :  { %v1107_v50 = vsel %vm554_vm1, %v604_v33, 0.0 }
 0x1ed   :  { %v1441_v34 = vpop.f32.mrb[4].mxu1 }
 0x1ee   :  { %v617_v35 = vpop.f32.mrb[5].mxu1  ;;  %v1172_v55 = vsel %vm554_vm1, %v1441_v34, 0.0 }
 0x1ef   :  { %v1442_v36 = vpop.f32.mrb[6].mxu1  ;;  %v1146_v58 = vsel %vm554_vm1, %v617_v35, 0.0 }
 0x1f0   :  { %v620_v37 = vpop.f32.mrb[7].mxu1  ;;  %v1185_v62 = vsel %vm554_vm1, %v1442_v36, 0.0 }
 0x1f1   :  { %v1159_v2 = vsel %vm554_vm1, %v620_v37, 0.0 }
 0x1f5   :  { %v1449_v38 = vpop.f32.mrb[8].mxu1 }
 0x1f6   :  { %v1121_v40 = vsel %vm554_vm1, %v1449_v38, 0.0  ;;  %v678_v41 = vpop.f32.mrb[9].mxu1 }
 0x1f7   :  { %v1122_v43 = vadd.f32 %v1121_v40, %v1120_v39  ;;  %v1095_v44 = vsel %vm554_vm1, %v678_v41, 0.0  ;;  %v1450_v45 = vpop.f32.mrb[10].mxu1 }
 0x1f8   :  { %v1096_v47 = vadd.f32 %v1095_v44, %v1094_v42  ;;  %v1134_v48 = vsel %vm554_vm1, %v1450_v45, 0.0  ;;  %v681_v49 = vpop.f32.mrb[11].mxu1 }
 0x1f9   :  { %v1135_v51 = vadd.f32 %v1134_v48, %v1133_v46  ;;  %v1108_v52 = vsel %vm554_vm1, %v681_v49, 0.0 }
 0x1fa   :  { %v1109_v53 = vadd.f32 %v1108_v52, %v1107_v50 }
 0x1fd   :  { %v1453_v54 = vpop.f32.mrb[12].mxu1 }
 0x1fe   :  { %v1173_v56 = vsel %vm554_vm1, %v1453_v54, 0.0  ;;  %v694_v57 = vpop.f32.mrb[13].mxu1 }
 0x1ff   :  { %v1174_v59 = vadd.f32 %v1173_v56, %v1172_v55  ;;  %v1147_v60 = vsel %vm554_vm1, %v694_v57, 0.0  ;;  %v1454_v61 = vpop.f32.mrb[14].mxu1 }
 0x200   :  { %v1148_v63 = vadd.f32 %v1147_v60, %v1146_v58  ;;  %v1186_v0 = vsel %vm554_vm1, %v1454_v61, 0.0  ;;  %v697_v1 = vpop.f32.mrb[15].mxu1 }
 0x201   :  { %v1187_v3 = vadd.f32 %v1186_v0, %v1185_v62  ;;  %v1160_v4 = vsel %vm554_vm1, %v697_v1, 0.0 }
 0x202   :  { %v1161_v5 = vadd.f32 %v1160_v4, %v1159_v2  ;;  %v1198_v2 = vld [vmem:[%s1794_s3] sm:$0x7f] }
 0x205   :  { %v1461_v6 = vpop.f32.mrb[16].mxu1 }
 0x206   :  { %v1123_v7 = vsel %vm554_vm1, %v1461_v6, 0.0  ;;  %v755_v8 = vpop.f32.mrb[17].mxu1  ;;  %v1200_v6 = vsel %vm1199_vm2, %v1198_v2, 0.0 }
 0x207   :  { %v1124_v9 = vadd.f32 %v1123_v7, %v1122_v43  ;;  %v1097_v10 = vsel %vm554_vm1, %v755_v8, 0.0  ;;  %v1462_v11 = vpop.f32.mrb[18].mxu1 }
 0x208   :  { %v1098_v12 = vadd.f32 %v1097_v10, %v1096_v47  ;;  %v1136_v13 = vsel %vm554_vm1, %v1462_v11, 0.0  ;;  %v758_v14 = vpop.f32.mrb[19].mxu1 }
 0x209   :  { %v1137_v15 = vadd.f32 %v1136_v13, %v1135_v51  ;;  %v1110_v16 = vsel %vm554_vm1, %v758_v14, 0.0 }
 0x20a   :  { %v1111_v17 = vadd.f32 %v1110_v16, %v1109_v53 }
 0x20d   :  { %v1465_v18 = vpop.f32.mrb[20].mxu1 }
 0x20e   :  { %v1175_v19 = vsel %vm554_vm1, %v1465_v18, 0.0  ;;  %v771_v20 = vpop.f32.mrb[21].mxu1 }
 0x20f   :  { %v1176_v21 = vadd.f32 %v1175_v19, %v1174_v59  ;;  %v1149_v22 = vsel %vm554_vm1, %v771_v20, 0.0  ;;  %v1466_v23 = vpop.f32.mrb[22].mxu1 }
 0x210   :  { %v1150_v24 = vadd.f32 %v1149_v22, %v1148_v63  ;;  %v1188_v25 = vsel %vm554_vm1, %v1466_v23, 0.0  ;;  %v774_v26 = vpop.f32.mrb[23].mxu1 }
 0x211   :  { %v1189_v27 = vadd.f32 %v1188_v25, %v1187_v3  ;;  %v1162_v28 = vsel %vm554_vm1, %v774_v26, 0.0 }
 0x212   :  { %v1163_v29 = vadd.f32 %v1162_v28, %v1161_v5 }
 0x215   :  { %v1473_v30 = vpop.f32.mrb[24].mxu1 }
 0x216   :  { %v1125_v31 = vsel %vm554_vm1, %v1473_v30, 0.0  ;;  %v832_v32 = vpop.f32.mrb[25].mxu1 }
 0x217   :  { %v1126_v33 = vadd.f32 %v1125_v31, %v1124_v9  ;;  %v1099_v34 = vsel %vm554_vm1, %v832_v32, 0.0  ;;  %v1474_v35 = vpop.f32.mrb[26].mxu1 }
 0x218   :  { %v1100_v36 = vadd.f32 %v1099_v34, %v1098_v12  ;;  %v1138_v37 = vsel %vm554_vm1, %v1474_v35, 0.0  ;;  %v835_v38 = vpop.f32.mrb[27].mxu1 }
 0x219   :  { %v1139_v39 = vadd.f32 %v1138_v37, %v1137_v15  ;;  %v1112_v40 = vsel %vm554_vm1, %v835_v38, 0.0  ;;  %v1201_v15 = vrot.slane %v1200_v6, 4 }
 0x21a   :  { %v1113_v41 = vadd.f32 %v1112_v40, %v1111_v17 }
 0x21b   :  { %v1202_v18 = vadd.f32 %v1201_v15, %v1200_v6 }
 0x21d   :  { %v1477_v42 = vpop.f32.mrb[28].mxu1 }
 0x21e   :  { %v1177_v43 = vsel %vm554_vm1, %v1477_v42, 0.0  ;;  %v848_v44 = vpop.f32.mrb[29].mxu1 }
 0x21f   :  { %v1178_v45 = vadd.f32 %v1177_v43, %v1176_v21  ;;  %v1151_v46 = vsel %vm554_vm1, %v848_v44, 0.0  ;;  %v1478_v47 = vpop.f32.mrb[30].mxu1 }
 0x220   :  { %v1152_v48 = vadd.f32 %v1151_v46, %v1150_v24  ;;  %v1190_v49 = vsel %vm554_vm1, %v1478_v47, 0.0  ;;  %v851_v50 = vpop.f32.mrb[31].mxu1 }
 0x221   :  { %v1191_v51 = vadd.f32 %v1190_v49, %v1189_v27  ;;  %v1164_v52 = vsel %vm554_vm1, %v851_v50, 0.0 }
 0x222   :  { %v1165_v53 = vadd.f32 %v1164_v52, %v1163_v29  ;;  %v1203_v29 = vrot.slane %v1202_v18, 2 }
 0x224   :  { %v1204_v32 = vadd.f32 %v1203_v29, %v1202_v18 }
 0x225   :  { %v1485_v54 = vpop.f32.mrb[32].mxu1 }
 0x226   :  { %v1127_v55 = vsel %vm554_vm1, %v1485_v54, 0.0  ;;  %v909_v56 = vpop.f32.mrb[33].mxu1  ;;  %v1205_v43 = vrot.slane %v1204_v32, 1 }
 0x227   :  { %v1128_v57 = vadd.f32 %v1127_v55, %v1126_v33  ;;  %v1101_v58 = vsel %vm554_vm1, %v909_v56, 0.0  ;;  %v1486_v59 = vpop.f32.mrb[34].mxu1 }
 0x228   :  { %v1102_v60 = vadd.f32 %v1101_v58, %v1100_v36  ;;  %v1140_v61 = vsel %vm554_vm1, %v1486_v59, 0.0  ;;  %v912_v62 = vpop.f32.mrb[35].mxu1  ;;  %v1206_v46 = vadd.f32 %v1205_v43, %v1204_v32 }
 0x229   :  { %v1141_v63 = vadd.f32 %v1140_v61, %v1139_v39  ;;  %v1114_v0 = vsel %vm554_vm1, %v912_v62, 0.0 }
 0x22a   :  { %v1115_v1 = vadd.f32 %v1114_v0, %v1113_v41 }
 0x22d   :  { %v1489_v3 = vpop.f32.mrb[36].mxu1 }
 0x22e   :  { %v1179_v4 = vsel %vm554_vm1, %v1489_v3, 0.0  ;;  %v925_v5 = vpop.f32.mrb[37].mxu1 }
 0x22f   :  { %v1180_v7 = vadd.f32 %v1179_v4, %v1178_v45  ;;  %v1153_v8 = vsel %vm554_vm1, %v925_v5, 0.0  ;;  %v1490_v9 = vpop.f32.mrb[38].mxu1 }
 0x230   :  { %v1154_v10 = vadd.f32 %v1153_v8, %v1152_v48  ;;  %v1192_v11 = vsel %vm554_vm1, %v1490_v9, 0.0  ;;  %v928_v12 = vpop.f32.mrb[39].mxu1 }
 0x231   :  { %v1193_v13 = vadd.f32 %v1192_v11, %v1191_v51  ;;  %v1166_v14 = vsel %vm554_vm1, %v928_v12, 0.0 }
 0x232   :  { %v1167_v16 = vadd.f32 %v1166_v14, %v1165_v53 }
 0x235   :  { %v1497_v17 = vpop.f32.mrb[40].mxu1 }
 0x236   :  { %v1129_v19 = vsel %vm554_vm1, %v1497_v17, 0.0  ;;  %v986_v20 = vpop.f32.mrb[41].mxu1 }
 0x237   :  { %v1130_v21 = vadd.f32 %v1129_v19, %v1128_v57  ;;  %v1103_v22 = vsel %vm554_vm1, %v986_v20, 0.0  ;;  %v1498_v23 = vpop.f32.mrb[42].mxu1 }
 0x238   :  { %v1104_v24 = vadd.f32 %v1103_v22, %v1102_v60  ;;  %v1142_v25 = vsel %vm554_vm1, %v1498_v23, 0.0  ;;  %v989_v26 = vpop.f32.mrb[43].mxu1 }
 0x239   :  { %v1143_v27 = vadd.f32 %v1142_v25, %v1141_v63  ;;  %v1116_v28 = vsel %vm554_vm1, %v989_v26, 0.0 }
 0x23a   :  { %v1117_v30 = vadd.f32 %v1116_v28, %v1115_v1 }
 0x23d   :  { %v1501_v31 = vpop.f32.mrb[44].mxu1 }
 0x23e   :  { %v1181_v33 = vsel %vm554_vm1, %v1501_v31, 0.0  ;;  %v1002_v34 = vpop.f32.mrb[45].mxu1 }
 0x23f   :  { %v1182_v35 = vadd.f32 %v1181_v33, %v1180_v7  ;;  %v1155_v36 = vsel %vm554_vm1, %v1002_v34, 0.0  ;;  %v1502_v37 = vpop.f32.mrb[46].mxu1 }
 0x240   :  { %v1156_v38 = vadd.f32 %v1155_v36, %v1154_v10  ;;  %v1194_v39 = vsel %vm554_vm1, %v1502_v37, 0.0  ;;  %v1005_v40 = vpop.f32.mrb[47].mxu1 }
 0x241   :  { %v1195_v41 = vadd.f32 %v1194_v39, %v1193_v13  ;;  %v1168_v42 = vsel %vm554_vm1, %v1005_v40, 0.0 }
 0x242   :  { %v1169_v44 = vadd.f32 %v1168_v42, %v1167_v16 }
 0x245   :  { %v1509_v45 = vpop.f32.mrb[48].mxu1 }
 0x246   :  { %v1131_v47 = vsel %vm554_vm1, %v1509_v45, 0.0  ;;  %v1063_v48 = vpop.f32.mrb[49].mxu1 }
 0x247   :  { %v1132_v49 = vadd.f32 %v1131_v47, %v1130_v21  ;;  %v1105_v50 = vsel %vm554_vm1, %v1063_v48, 0.0  ;;  %v1510_v51 = vpop.f32.mrb[50].mxu1 }
 0x248   :  { %v1106_v52 = vadd.f32 %v1105_v50, %v1104_v24  ;;  %v1144_v53 = vsel %vm554_vm1, %v1510_v51, 0.0  ;;  %v1066_v54 = vpop.f32.mrb[51].mxu1 }
 0x249   :  { %v1209_v55 = vadd.f32 %v1206_v46, %v1132_v49  ;;  %v1145_v56 = vadd.f32 %v1144_v53, %v1143_v27  ;;  %v1118_v57 = vsel %vm554_vm1, %v1066_v54, 0.0 }
 0x24a   :  { %v1207_v58 = vadd.f32 %v1206_v46, %v1106_v52  ;;  %v1119_v59 = vadd.f32 %v1118_v57, %v1117_v30 }
 0x24b   :  { %v1217_v60 = vmul.f32 0.14285715, %v1209_v55  ;;  %v1210_v61 = vadd.f32 %v1206_v46, %v1145_v56 }
 0x24c   :  { %v1215_v62 = vmul.f32 0.14285715, %v1207_v58  ;;  %v1208_v63 = vadd.f32 %v1206_v46, %v1119_v59 }
 0x24d   :  { %1225 = vst.msk [vmem:[%s1795_s4 + $0x10] sm:$0xff] %vm554_vm1, %v1217_v60  ;;  %v1218_v0 = vmul.f32 0.14285715, %v1210_v61  ;;  %v1513_v1 = vpop.f32.mrb[52].mxu1 }
 0x24e   :  { %1223 = vst.msk [vmem:[%s1795_s4] sm:$0xff] %vm554_vm1, %v1215_v62  ;;  %v1216_v2 = vmul.f32 0.14285715, %v1208_v63  ;;  %v1183_v3 = vsel %vm554_vm1, %v1513_v1, 0.0  ;;  %v1079_v4 = vpop.f32.mrb[53].mxu1 }
 0x24f   :  { %1226 = vst.msk [vmem:[%s1795_s4 + $0x18] sm:$0xff] %vm554_vm1, %v1218_v0  ;;  %v1184_v5 = vadd.f32 %v1183_v3, %v1182_v35  ;;  %v1157_v6 = vsel %vm554_vm1, %v1079_v4, 0.0  ;;  %v1514_v7 = vpop.f32.mrb[54].mxu1 }
 0x250   :  { %1224 = vst.msk [vmem:[%s1795_s4 + $0x8] sm:$0xff] %vm554_vm1, %v1216_v2  ;;  %v1158_v8 = vadd.f32 %v1157_v6, %v1156_v38  ;;  %v1196_v9 = vsel %vm554_vm1, %v1514_v7, 0.0  ;;  %v1082_v10 = vpop.f32.mrb[55].mxu1 }
 0x251   :  { %v1213_v11 = vadd.f32 %v1206_v46, %v1184_v5  ;;  %v1197_v12 = vadd.f32 %v1196_v9, %v1195_v41  ;;  %v1170_v13 = vsel %vm554_vm1, %v1082_v10, 0.0 }
 0x252   :  { %v1211_v14 = vadd.f32 %v1206_v46, %v1158_v8  ;;  %v1171_v15 = vadd.f32 %v1170_v13, %v1169_v44 }
 0x253   :  { %v1221_v16 = vmul.f32 0.14285715, %v1213_v11  ;;  %v1214_v17 = vadd.f32 %v1206_v46, %v1197_v12 }
 0x254   :  { %v1219_v18 = vmul.f32 0.14285715, %v1211_v14  ;;  %v1212_v19 = vadd.f32 %v1206_v46, %v1171_v15 }
 0x255   :  { %1229 = vst.msk [vmem:[%s1795_s4 + $0x30] sm:$0xff] %vm554_vm1, %v1221_v16  ;;  %v1222_v20 = vmul.f32 0.14285715, %v1214_v17 }
 0x256   :  { %1227 = vst.msk [vmem:[%s1795_s4 + $0x20] sm:$0xff] %vm554_vm1, %v1219_v18  ;;  %v1220_v21 = vmul.f32 0.14285715, %v1212_v19 }
 0x257   :  { %1230 = vst.msk [vmem:[%s1795_s4 + $0x38] sm:$0xff] %vm554_vm1, %v1222_v20 }
 0x258   :  { %1228 = vst.msk [vmem:[%s1795_s4 + $0x28] sm:$0xff] %vm554_vm1, %v1220_v21 }
 0x259   :  { %1235 = vsyncpa [#allocation3], 1 }
 0x25a   :  { %1236 = vsyncpa [#allocation5], 1 }

</bundles_post_ra>
